<compile_context>
chip_gen: v7x
topology: tpu7x:2x2x1
jax: 0.10.0
libtpu: 0.0.40
codegen_flags: <defaults>
</compile_context>

<pallas_src>
import functools

import jax
import jax.numpy as jnp
from jax import lax
from jax.experimental import pallas as pl
from jax.experimental.pallas import tpu as pltpu

_EPS = 1e-5


def _residual_kernel(x_ref, w_ref, b_ref, o_ref, *, use_mxu):
    # x_ref/o_ref: (nb, C, T) — channels on sublanes, pixels on lanes.
    # use_mxu:  w_ref (Cout, Cin) VMEM (pre-cast), b_ref (Cout, 1) VMEM f32.
    # else:     w_ref (C*C,) SMEM f32 scalars, b_ref (C,) SMEM f32 scalars.
    nb, C, T = x_ref.shape
    eps = jnp.float32(_EPS)
    inv_c = jnp.float32(1.0 / C)

    for b in range(nb):                                  # static unroll, nb small
        x = x_ref[b].astype(jnp.float32)                 # (C, T)

        # Two-pass mean / variance over channels (sublane/XLU reduce) — matches
        # the reference LayerNorm form and avoids E[x^2]-E[x]^2 cancellation.
        mean = jnp.sum(x, axis=0, keepdims=True) * inv_c          # (1, T)
        d = x - mean
        var = jnp.sum(d * d, axis=0, keepdims=True) * inv_c       # (1, T)
        xn = d * lax.rsqrt(var + eps)                             # (C, T); g folded into w

        if use_mxu:
            w = w_ref[...]                                        # (Cout, Cin), pre-cast in wrapper
            y = jnp.dot(w, xn.astype(w.dtype),
                        preferred_element_type=jnp.float32) + b_ref[...]
        else:
            # Tiny-C path (C <= 8): SMEM scalar weights x vector rows — pure VPU,
            # no cross-lane column selects, no near-empty MXU matmul.
            rows = []
            for o in range(C):
                acc = jnp.full((1, T), b_ref[o], jnp.float32)
                for cin in range(C):
                    acc = acc + w_ref[o * C + cin] * xn[cin:cin + 1, :]
                rows.append(acc)
            y = jnp.concatenate(rows, axis=0)                     # (C, T)

        # Residual skip connection: fn(x) + x (tile already resident in vregs).
        o_ref[b] = (y + x).astype(o_ref.dtype)


def _choose_tiling(N, C, HW, dtype, *, target_block_bytes, tiny_c):
    """Pick (nb, tile_hw, HW_pad, padded_C, itemsize) for ~target-sized blocks."""
    itemsize = jnp.dtype(dtype).itemsize
    sublane = max(8, 32 // itemsize)                 # f32: 8, bf16: 16, int8: 32
    pC = -(-C // sublane) * sublane                  # sublane-padded channels (real VMEM rows)
    HW_p = -(-HW // 128) * 128                       # lane-pad spatial extent

    row_bytes = pC * itemsize
    max_lanes = max(128, (target_block_bytes // row_bytes) // 128 * 128)

    # Prefer the largest multiple-of-128 divisor of HW_p within budget (zero pad
    # waste); only accept extra lane padding if the exact divisor would more than
    # halve the tile.
    cap = min(HW_p, max_lanes)
    exact = 128
    d = cap // 128 * 128
    while d >= 128:
        if HW_p % d == 0:
            exact = d
            break
        d -= 128
    tile_hw = exact if exact >= cap // 2 else cap
    HW_pad = -(-HW_p // tile_hw) * tile_hw

    # Batch several images per block when one spatial tile covers the whole image
    # and the block is still far below target (amortizes per-grid-step overhead).
    base_block = pC * tile_hw * itemsize
    nb = 1
    if HW_pad == tile_hw and N > 1 and base_block < target_block_bytes:
        nb_cap = 8 if not tiny_c else max(1, min(8, 256 // max(1, C * C)))  # bound static unroll
        nb = max(1, min(N, nb_cap, target_block_bytes // base_block))
        while N % nb:
            nb -= 1
    # Blocks are capped at ~target bytes, so large inputs still yield many grid
    # steps along the "parallel" axes (keeps both v7x TensorCores fed).
    return nb, tile_hw, HW_pad, pC, itemsize


def residual_prenorm_conv1x1(x_nchw, g, conv_w, conv_b, *,
                             target_block_bytes=2 << 20,
                             use_bf16_matmul=None):
    """Fused Residual(PreNorm-LayerNorm over C -> Conv2d(dim, dim, 1))(x) = fn(x) + x.

    x_nchw: (N, C, H, W); g: (1, C, 1, 1); conv_w: (Cout, C, 1, 1); conv_b: (Cout,).
    """
    N, C, H, W = x_nchw.shape
    Cout = conv_w.shape[0]
    assert Cout == C, "Residual requires fn to preserve the channel dimension"
    HW = H * W

    use_mxu = C > 8                                   # tiny C: MXU would be >95% idle
    nb, tile_hw, HW_pad, pC, itemsize = _choose_tiling(
        N, C, HW, x_nchw.dtype,
        target_block_bytes=target_block_bytes, tiny_c=not use_mxu)

    # Free, contiguous reshape — no transpose.  Lane-pad HW once in HBM if needed
    # so every block/store is lane-dense and budgeted (padded pixels are discarded).
    x3d = x_nchw.reshape(N, C, HW)
    if HW_pad != HW:
        x3d = jnp.pad(x3d, ((0, 0), (0, 0), (0, HW_pad - HW)))

    # Fold the LayerNorm gain into the (linear) 1x1 conv: W @ (xn * g) == (W*g) @ xn.
    w_eff = (conv_w.reshape(Cout, C).astype(jnp.float32)
             * g.reshape(1, C).astype(jnp.float32))
    b_f32 = conv_b.astype(jnp.float32)

    if use_mxu:
        if use_bf16_matmul is None:
            use_bf16_matmul = x_nchw.dtype == jnp.bfloat16
        # Cast hoisted out of the kernel (no per-grid-step VPU cast of (C,C)).
        w_arg = w_eff.astype(jnp.bfloat16 if use_bf16_matmul else jnp.float32)
        b_arg = b_f32.reshape(Cout, 1)
        w_spec = pl.BlockSpec((Cout, C), lambda n, t: (0, 0))
        b_spec = pl.BlockSpec((Cout, 1), lambda n, t: (0, 0))
        const_bytes = 2 * (w_arg.size * w_arg.dtype.itemsize + b_arg.size * 4)
    else:
        # Scalar weights/bias in SMEM (flattened 1-D to avoid 2-D SMEM padding).
        w_arg = w_eff.reshape(-1)
        b_arg = b_f32
        w_spec = pl.BlockSpec(memory_space=pltpu.MemorySpace.SMEM)
        b_spec = pl.BlockSpec(memory_space=pltpu.MemorySpace.SMEM)
        const_bytes = 0

    grid = (N // nb, HW_pad // tile_hw)

    # VMEM budget with padded-C accounting: double-buffered in + out blocks plus
    # constants plus slack.  Kept well under v7x's 64 MiB physical VMEM.
    block_bytes = nb * pC * tile_hw * itemsize
    vmem_limit = int(min(64 << 20,
                         max(4 << 20, 4 * block_bytes + const_bytes + (2 << 20))))

    kernel = functools.partial(_residual_kernel, use_mxu=use_mxu)

    out3d = pl.pallas_call(
        kernel,
        out_shape=jax.ShapeDtypeStruct((N, C, HW_pad), x3d.dtype),
        grid_spec=pltpu.PrefetchScalarGridSpec(
            num_scalar_prefetch=0,
            grid=grid,
            in_specs=[
                pl.BlockSpec((nb, C, tile_hw), lambda n, t: (n, 0, t)),
                w_spec,
                b_spec,
            ],
            out_specs=pl.BlockSpec((nb, C, tile_hw), lambda n, t: (n, 0, t)),
        ),
        compiler_params=pltpu.CompilerParams(
            dimension_semantics=("parallel", "parallel"),
            vmem_limit_bytes=vmem_limit,
        ),
    )(x3d, w_arg, b_arg)

    if HW_pad != HW:
        out3d = out3d[..., :HW]
    return out3d.reshape(N, C, H, W)


def _reference(x_nchw, g, conv_w, conv_b):
    mean = jnp.mean(x_nchw, axis=1, keepdims=True)
    var = jnp.mean((x_nchw - mean) ** 2, axis=1, keepdims=True)
    xn = (x_nchw - mean) * lax.rsqrt(var + _EPS) * g
    y = lax.conv_general_dilated(
        xn, conv_w, window_strides=(1, 1), padding="VALID",
        dimension_numbers=("NCHW", "OIHW", "NCHW"))
    # Residual: fn(x) + x
    return y + conv_b.reshape(1, -1, 1, 1) + x_nchw


if __name__ == "__main__":
    key = jax.random.PRNGKey(0)
    kx, kw, kb, kx2, kw2, kb2 = jax.random.split(key, 6)

    # --- Primary test: the module's small shape (tiny-C / SMEM-scalar path) ---
    N, C, H, W = 2, 4, 16, 16
    x = jax.random.normal(kx, (N, C, H, W), dtype=jnp.float32)
    g = jnp.ones((1, C, 1, 1), dtype=jnp.float32)             # LayerNorm gain init
    conv_w = 0.1 * jax.random.normal(kw, (C, C, 1, 1), dtype=jnp.float32)
    conv_b = 0.05 * jax.random.normal(kb, (C,), dtype=jnp.float32)

    out = jax.block_until_ready(residual_prenorm_conv1x1(x, g, conv_w, conv_b))
    ref = _reference(x, g, conv_w, conv_b)
    assert out.shape == (N, C, H, W)
    assert jnp.allclose(out, ref, atol=2e-5, rtol=2e-5)

    # --- Secondary test: larger-C MXU path + lane padding (HW=64 -> 128) ---
    C2, H2, W2 = 32, 8, 8
    x2 = jax.random.normal(kx2, (N, C2, H2, W2), dtype=jnp.float32)
    g2 = jnp.ones((1, C2, 1, 1), dtype=jnp.float32)
    conv_w2 = 0.1 * jax.random.normal(kw2, (C2, C2, 1, 1), dtype=jnp.float32)
    conv_b2 = 0.05 * jax.random.normal(kb2, (C2,), dtype=jnp.float32)

    out2 = jax.block_until_ready(residual_prenorm_conv1x1(x2, g2, conv_w2, conv_b2))
    ref2 = _reference(x2, g2, conv_w2, conv_b2)
    assert out2.shape == (N, C2, H2, W2)
    assert jnp.allclose(out2, ref2, atol=1e-4, rtol=1e-4)

    # TODO(synk): `Residual` wraps an arbitrary `fn`; only the PreNorm-LayerNorm +
    # 1x1 Conv2d instantiation is fused here — other `fn`s need their own kernels.
    print("KERNEL_OK")
</pallas_src>

<mosaic_0001>
module attributes {stable_mosaic.version = 11 : i64} {
  func.func @_residual_kernel(%arg0: i32, %arg1: i32, %arg2: memref<2x4x256xf32, #tpu.memory_space<vmem>>, %arg3: memref<16xf32, #tpu.memory_space<smem>>, %arg4: memref<4xf32, #tpu.memory_space<smem>>, %arg5: memref<2x4x256xf32, #tpu.memory_space<vmem>>) attributes {dimension_semantics = [#tpu.dimension_semantics<parallel>, #tpu.dimension_semantics<parallel>], iteration_bounds = array<i64: 1, 1>, scalar_prefetch = 0 : i64, scratch_operands = 0 : i64, tpu.core_type = #tpu.core_type<tc>, window_params = [{transform_indices = @transform_0, window_bounds = array<i64: 2, 4, 256>}, {transform_indices = @transform_1, window_bounds = array<i64: 16>}, {transform_indices = @transform_2, window_bounds = array<i64: 4>}, {transform_indices = @transform_3, window_bounds = array<i64: 2, 4, 256>}]} {
    %c0 = arith.constant 0 : index
    %c0_0 = arith.constant 0 : index
    %c0_1 = arith.constant 0 : index
    %0 = vector.load %arg2[%c0, %c0_0, %c0_1] : memref<2x4x256xf32, #tpu.memory_space<vmem>>, vector<1x4x256xf32>
    %1 = vector.shape_cast %0 : vector<1x4x256xf32> to vector<4x256xf32>
    %cst = arith.constant dense<0.000000e+00> : vector<256xf32>
    %2 = vector.multi_reduction <add>, %1, %cst [0] : vector<4x256xf32> to vector<256xf32>
    %3 = vector.shape_cast %2 : vector<256xf32> to vector<1x256xf32>
    %cst_2 = arith.constant 2.500000e-01 : f32
    %4 = vector.broadcast %cst_2 : f32 to vector<1x256xf32>
    %5 = arith.mulf %3, %4 : vector<1x256xf32>
    %6 = vector.broadcast %5 : vector<1x256xf32> to vector<4x256xf32>
    %7 = arith.subf %1, %6 : vector<4x256xf32>
    %8 = arith.mulf %7, %7 : vector<4x256xf32>
    %cst_3 = arith.constant dense<0.000000e+00> : vector<256xf32>
    %9 = vector.multi_reduction <add>, %8, %cst_3 [0] : vector<4x256xf32> to vector<256xf32>
    %10 = vector.shape_cast %9 : vector<256xf32> to vector<1x256xf32>
    %cst_4 = arith.constant 2.500000e-01 : f32
    %11 = vector.broadcast %cst_4 : f32 to vector<1x256xf32>
    %12 = arith.mulf %10, %11 : vector<1x256xf32>
    %cst_5 = arith.constant 9.99999974E-6 : f32
    %13 = vector.broadcast %cst_5 : f32 to vector<1x256xf32>
    %14 = arith.addf %12, %13 : vector<1x256xf32>
    %15 = math.rsqrt %14 : vector<1x256xf32>
    %16 = vector.broadcast %15 : vector<1x256xf32> to vector<4x256xf32>
    %17 = arith.mulf %7, %16 : vector<4x256xf32>
    %c0_6 = arith.constant 0 : index
    %18 = memref.load %arg4[%c0_6] : memref<4xf32, #tpu.memory_space<smem>>
    %19 = vector.broadcast %18 : f32 to vector<1x256xf32>
    %c0_7 = arith.constant 0 : index
    %20 = memref.load %arg3[%c0_7] : memref<16xf32, #tpu.memory_space<smem>>
    %21 = vector.extract_strided_slice %17 {offsets = [0, 0], sizes = [1, 256], strides = [1, 1]} : vector<4x256xf32> to vector<1x256xf32>
    %22 = vector.broadcast %20 : f32 to vector<1x256xf32>
    %23 = arith.mulf %22, %21 : vector<1x256xf32>
    %24 = arith.addf %19, %23 : vector<1x256xf32>
    %c1 = arith.constant 1 : index
    %25 = memref.load %arg3[%c1] : memref<16xf32, #tpu.memory_space<smem>>
    %26 = vector.extract_strided_slice %17 {offsets = [1, 0], sizes = [1, 256], strides = [1, 1]} : vector<4x256xf32> to vector<1x256xf32>
    %27 = vector.broadcast %25 : f32 to vector<1x256xf32>
    %28 = arith.mulf %27, %26 : vector<1x256xf32>
    %29 = arith.addf %24, %28 : vector<1x256xf32>
    %c2 = arith.constant 2 : index
    %30 = memref.load %arg3[%c2] : memref<16xf32, #tpu.memory_space<smem>>
    %31 = vector.extract_strided_slice %17 {offsets = [2, 0], sizes = [1, 256], strides = [1, 1]} : vector<4x256xf32> to vector<1x256xf32>
    %32 = vector.broadcast %30 : f32 to vector<1x256xf32>
    %33 = arith.mulf %32, %31 : vector<1x256xf32>
    %34 = arith.addf %29, %33 : vector<1x256xf32>
    %c3 = arith.constant 3 : index
    %35 = memref.load %arg3[%c3] : memref<16xf32, #tpu.memory_space<smem>>
    %36 = vector.extract_strided_slice %17 {offsets = [3, 0], sizes = [1, 256], strides = [1, 1]} : vector<4x256xf32> to vector<1x256xf32>
    %37 = vector.broadcast %35 : f32 to vector<1x256xf32>
    %38 = arith.mulf %37, %36 : vector<1x256xf32>
    %39 = arith.addf %34, %38 : vector<1x256xf32>
    %c1_8 = arith.constant 1 : index
    %40 = memref.load %arg4[%c1_8] : memref<4xf32, #tpu.memory_space<smem>>
    %41 = vector.broadcast %40 : f32 to vector<1x256xf32>
    %c4 = arith.constant 4 : index
    %42 = memref.load %arg3[%c4] : memref<16xf32, #tpu.memory_space<smem>>
    %43 = vector.extract_strided_slice %17 {offsets = [0, 0], sizes = [1, 256], strides = [1, 1]} : vector<4x256xf32> to vector<1x256xf32>
    %44 = vector.broadcast %42 : f32 to vector<1x256xf32>
    %45 = arith.mulf %44, %43 : vector<1x256xf32>
    %46 = arith.addf %41, %45 : vector<1x256xf32>
    %c5 = arith.constant 5 : index
    %47 = memref.load %arg3[%c5] : memref<16xf32, #tpu.memory_space<smem>>
    %48 = vector.extract_strided_slice %17 {offsets = [1, 0], sizes = [1, 256], strides = [1, 1]} : vector<4x256xf32> to vector<1x256xf32>
    %49 = vector.broadcast %47 : f32 to vector<1x256xf32>
    %50 = arith.mulf %49, %48 : vector<1x256xf32>
    %51 = arith.addf %46, %50 : vector<1x256xf32>
    %c6 = arith.constant 6 : index
    %52 = memref.load %arg3[%c6] : memref<16xf32, #tpu.memory_space<smem>>
    %53 = vector.extract_strided_slice %17 {offsets = [2, 0], sizes = [1, 256], strides = [1, 1]} : vector<4x256xf32> to vector<1x256xf32>
    %54 = vector.broadcast %52 : f32 to vector<1x256xf32>
    %55 = arith.mulf %54, %53 : vector<1x256xf32>
    %56 = arith.addf %51, %55 : vector<1x256xf32>
    %c7 = arith.constant 7 : index
    %57 = memref.load %arg3[%c7] : memref<16xf32, #tpu.memory_space<smem>>
    %58 = vector.extract_strided_slice %17 {offsets = [3, 0], sizes = [1, 256], strides = [1, 1]} : vector<4x256xf32> to vector<1x256xf32>
    %59 = vector.broadcast %57 : f32 to vector<1x256xf32>
    %60 = arith.mulf %59, %58 : vector<1x256xf32>
    %61 = arith.addf %56, %60 : vector<1x256xf32>
    %c2_9 = arith.constant 2 : index
    %62 = memref.load %arg4[%c2_9] : memref<4xf32, #tpu.memory_space<smem>>
    %63 = vector.broadcast %62 : f32 to vector<1x256xf32>
    %c8 = arith.constant 8 : index
    %64 = memref.load %arg3[%c8] : memref<16xf32, #tpu.memory_space<smem>>
    %65 = vector.extract_strided_slice %17 {offsets = [0, 0], sizes = [1, 256], strides = [1, 1]} : vector<4x256xf32> to vector<1x256xf32>
    %66 = vector.broadcast %64 : f32 to vector<1x256xf32>
    %67 = arith.mulf %66, %65 : vector<1x256xf32>
    %68 = arith.addf %63, %67 : vector<1x256xf32>
    %c9 = arith.constant 9 : index
    %69 = memref.load %arg3[%c9] : memref<16xf32, #tpu.memory_space<smem>>
    %70 = vector.extract_strided_slice %17 {offsets = [1, 0], sizes = [1, 256], strides = [1, 1]} : vector<4x256xf32> to vector<1x256xf32>
    %71 = vector.broadcast %69 : f32 to vector<1x256xf32>
    %72 = arith.mulf %71, %70 : vector<1x256xf32>
    %73 = arith.addf %68, %72 : vector<1x256xf32>
    %c10 = arith.constant 10 : index
    %74 = memref.load %arg3[%c10] : memref<16xf32, #tpu.memory_space<smem>>
    %75 = vector.extract_strided_slice %17 {offsets = [2, 0], sizes = [1, 256], strides = [1, 1]} : vector<4x256xf32> to vector<1x256xf32>
    %76 = vector.broadcast %74 : f32 to vector<1x256xf32>
    %77 = arith.mulf %76, %75 : vector<1x256xf32>
    %78 = arith.addf %73, %77 : vector<1x256xf32>
    %c11 = arith.constant 11 : index
    %79 = memref.load %arg3[%c11] : memref<16xf32, #tpu.memory_space<smem>>
    %80 = vector.extract_strided_slice %17 {offsets = [3, 0], sizes = [1, 256], strides = [1, 1]} : vector<4x256xf32> to vector<1x256xf32>
    %81 = vector.broadcast %79 : f32 to vector<1x256xf32>
    %82 = arith.mulf %81, %80 : vector<1x256xf32>
    %83 = arith.addf %78, %82 : vector<1x256xf32>
    %c3_10 = arith.constant 3 : index
    %84 = memref.load %arg4[%c3_10] : memref<4xf32, #tpu.memory_space<smem>>
    %85 = vector.broadcast %84 : f32 to vector<1x256xf32>
    %c12 = arith.constant 12 : index
    %86 = memref.load %arg3[%c12] : memref<16xf32, #tpu.memory_space<smem>>
    %87 = vector.extract_strided_slice %17 {offsets = [0, 0], sizes = [1, 256], strides = [1, 1]} : vector<4x256xf32> to vector<1x256xf32>
    %88 = vector.broadcast %86 : f32 to vector<1x256xf32>
    %89 = arith.mulf %88, %87 : vector<1x256xf32>
    %90 = arith.addf %85, %89 : vector<1x256xf32>
    %c13 = arith.constant 13 : index
    %91 = memref.load %arg3[%c13] : memref<16xf32, #tpu.memory_space<smem>>
    %92 = vector.extract_strided_slice %17 {offsets = [1, 0], sizes = [1, 256], strides = [1, 1]} : vector<4x256xf32> to vector<1x256xf32>
    %93 = vector.broadcast %91 : f32 to vector<1x256xf32>
    %94 = arith.mulf %93, %92 : vector<1x256xf32>
    %95 = arith.addf %90, %94 : vector<1x256xf32>
    %c14 = arith.constant 14 : index
    %96 = memref.load %arg3[%c14] : memref<16xf32, #tpu.memory_space<smem>>
    %97 = vector.extract_strided_slice %17 {offsets = [2, 0], sizes = [1, 256], strides = [1, 1]} : vector<4x256xf32> to vector<1x256xf32>
    %98 = vector.broadcast %96 : f32 to vector<1x256xf32>
    %99 = arith.mulf %98, %97 : vector<1x256xf32>
    %100 = arith.addf %95, %99 : vector<1x256xf32>
    %c15 = arith.constant 15 : index
    %101 = memref.load %arg3[%c15] : memref<16xf32, #tpu.memory_space<smem>>
    %102 = vector.extract_strided_slice %17 {offsets = [3, 0], sizes = [1, 256], strides = [1, 1]} : vector<4x256xf32> to vector<1x256xf32>
    %103 = vector.broadcast %101 : f32 to vector<1x256xf32>
    %104 = arith.mulf %103, %102 : vector<1x256xf32>
    %105 = arith.addf %100, %104 : vector<1x256xf32>
    %106 = tpu.concatenate %39, %61, %83, %105 in 0 : vector<1x256xf32>, vector<1x256xf32>, vector<1x256xf32>, vector<1x256xf32> -> vector<4x256xf32>
    %107 = arith.addf %106, %1 : vector<4x256xf32>
    %c0_11 = arith.constant 0 : index
    %c0_12 = arith.constant 0 : index
    %c0_13 = arith.constant 0 : index
    %108 = vector.load %arg5[%c0_11, %c0_12, %c0_13] : memref<2x4x256xf32, #tpu.memory_space<vmem>>, vector<1x4x256xf32>
    %109 = vector.shape_cast %108 : vector<1x4x256xf32> to vector<4x256xf32>
    %110 = vector.shape_cast %107 : vector<4x256xf32> to vector<1x4x256xf32>
    tpu.vector_store %arg5[%c0_11, %c0_12, %c0_13], %110 {strides = array<i32>} : memref<2x4x256xf32, #tpu.memory_space<vmem>>, vector<1x4x256xf32>,
    %c1_14 = arith.constant 1 : index
    %c0_15 = arith.constant 0 : index
    %c0_16 = arith.constant 0 : index
    %111 = vector.load %arg2[%c1_14, %c0_15, %c0_16] : memref<2x4x256xf32, #tpu.memory_space<vmem>>, vector<1x4x256xf32>
    %112 = vector.shape_cast %111 : vector<1x4x256xf32> to vector<4x256xf32>
    %cst_17 = arith.constant dense<0.000000e+00> : vector<256xf32>
    %113 = vector.multi_reduction <add>, %112, %cst_17 [0] : vector<4x256xf32> to vector<256xf32>
    %114 = vector.shape_cast %113 : vector<256xf32> to vector<1x256xf32>
    %cst_18 = arith.constant 2.500000e-01 : f32
    %115 = vector.broadcast %cst_18 : f32 to vector<1x256xf32>
    %116 = arith.mulf %114, %115 : vector<1x256xf32>
    %117 = vector.broadcast %116 : vector<1x256xf32> to vector<4x256xf32>
    %118 = arith.subf %112, %117 : vector<4x256xf32>
    %119 = arith.mulf %118, %118 : vector<4x256xf32>
    %cst_19 = arith.constant dense<0.000000e+00> : vector<256xf32>
    %120 = vector.multi_reduction <add>, %119, %cst_19 [0] : vector<4x256xf32> to vector<256xf32>
    %121 = vector.shape_cast %120 : vector<256xf32> to vector<1x256xf32>
    %cst_20 = arith.constant 2.500000e-01 : f32
    %122 = vector.broadcast %cst_20 : f32 to vector<1x256xf32>
    %123 = arith.mulf %121, %122 : vector<1x256xf32>
    %cst_21 = arith.constant 9.99999974E-6 : f32
    %124 = vector.broadcast %cst_21 : f32 to vector<1x256xf32>
    %125 = arith.addf %123, %124 : vector<1x256xf32>
    %126 = math.rsqrt %125 : vector<1x256xf32>
    %127 = vector.broadcast %126 : vector<1x256xf32> to vector<4x256xf32>
    %128 = arith.mulf %118, %127 : vector<4x256xf32>
    %c0_22 = arith.constant 0 : index
    %129 = memref.load %arg4[%c0_22] : memref<4xf32, #tpu.memory_space<smem>>
    %130 = vector.broadcast %129 : f32 to vector<1x256xf32>
    %c0_23 = arith.constant 0 : index
    %131 = memref.load %arg3[%c0_23] : memref<16xf32, #tpu.memory_space<smem>>
    %132 = vector.extract_strided_slice %128 {offsets = [0, 0], sizes = [1, 256], strides = [1, 1]} : vector<4x256xf32> to vector<1x256xf32>
    %133 = vector.broadcast %131 : f32 to vector<1x256xf32>
    %134 = arith.mulf %133, %132 : vector<1x256xf32>
    %135 = arith.addf %130, %134 : vector<1x256xf32>
    %c1_24 = arith.constant 1 : index
    %136 = memref.load %arg3[%c1_24] : memref<16xf32, #tpu.memory_space<smem>>
    %137 = vector.extract_strided_slice %128 {offsets = [1, 0], sizes = [1, 256], strides = [1, 1]} : vector<4x256xf32> to vector<1x256xf32>
    %138 = vector.broadcast %136 : f32 to vector<1x256xf32>
    %139 = arith.mulf %138, %137 : vector<1x256xf32>
    %140 = arith.addf %135, %139 : vector<1x256xf32>
    %c2_25 = arith.constant 2 : index
    %141 = memref.load %arg3[%c2_25] : memref<16xf32, #tpu.memory_space<smem>>
    %142 = vector.extract_strided_slice %128 {offsets = [2, 0], sizes = [1, 256], strides = [1, 1]} : vector<4x256xf32> to vector<1x256xf32>
    %143 = vector.broadcast %141 : f32 to vector<1x256xf32>
    %144 = arith.mulf %143, %142 : vector<1x256xf32>
    %145 = arith.addf %140, %144 : vector<1x256xf32>
    %c3_26 = arith.constant 3 : index
    %146 = memref.load %arg3[%c3_26] : memref<16xf32, #tpu.memory_space<smem>>
    %147 = vector.extract_strided_slice %128 {offsets = [3, 0], sizes = [1, 256], strides = [1, 1]} : vector<4x256xf32> to vector<1x256xf32>
    %148 = vector.broadcast %146 : f32 to vector<1x256xf32>
    %149 = arith.mulf %148, %147 : vector<1x256xf32>
    %150 = arith.addf %145, %149 : vector<1x256xf32>
    %c1_27 = arith.constant 1 : index
    %151 = memref.load %arg4[%c1_27] : memref<4xf32, #tpu.memory_space<smem>>
    %152 = vector.broadcast %151 : f32 to vector<1x256xf32>
    %c4_28 = arith.constant 4 : index
    %153 = memref.load %arg3[%c4_28] : memref<16xf32, #tpu.memory_space<smem>>
    %154 = vector.extract_strided_slice %128 {offsets = [0, 0], sizes = [1, 256], strides = [1, 1]} : vector<4x256xf32> to vector<1x256xf32>
    %155 = vector.broadcast %153 : f32 to vector<1x256xf32>
    %156 = arith.mulf %155, %154 : vector<1x256xf32>
    %157 = arith.addf %152, %156 : vector<1x256xf32>
    %c5_29 = arith.constant 5 : index
    %158 = memref.load %arg3[%c5_29] : memref<16xf32, #tpu.memory_space<smem>>
    %159 = vector.extract_strided_slice %128 {offsets = [1, 0], sizes = [1, 256], strides = [1, 1]} : vector<4x256xf32> to vector<1x256xf32>
    %160 = vector.broadcast %158 : f32 to vector<1x256xf32>
    %161 = arith.mulf %160, %159 : vector<1x256xf32>
    %162 = arith.addf %157, %161 : vector<1x256xf32>
    %c6_30 = arith.constant 6 : index
    %163 = memref.load %arg3[%c6_30] : memref<16xf32, #tpu.memory_space<smem>>
    %164 = vector.extract_strided_slice %128 {offsets = [2, 0], sizes = [1, 256], strides = [1, 1]} : vector<4x256xf32> to vector<1x256xf32>
    %165 = vector.broadcast %163 : f32 to vector<1x256xf32>
    %166 = arith.mulf %165, %164 : vector<1x256xf32>
    %167 = arith.addf %162, %166 : vector<1x256xf32>
    %c7_31 = arith.constant 7 : index
    %168 = memref.load %arg3[%c7_31] : memref<16xf32, #tpu.memory_space<smem>>
    %169 = vector.extract_strided_slice %128 {offsets = [3, 0], sizes = [1, 256], strides = [1, 1]} : vector<4x256xf32> to vector<1x256xf32>
    %170 = vector.broadcast %168 : f32 to vector<1x256xf32>
    %171 = arith.mulf %170, %169 : vector<1x256xf32>
    %172 = arith.addf %167, %171 : vector<1x256xf32>
    %c2_32 = arith.constant 2 : index
    %173 = memref.load %arg4[%c2_32] : memref<4xf32, #tpu.memory_space<smem>>
    %174 = vector.broadcast %173 : f32 to vector<1x256xf32>
    %c8_33 = arith.constant 8 : index
    %175 = memref.load %arg3[%c8_33] : memref<16xf32, #tpu.memory_space<smem>>
    %176 = vector.extract_strided_slice %128 {offsets = [0, 0], sizes = [1, 256], strides = [1, 1]} : vector<4x256xf32> to vector<1x256xf32>
    %177 = vector.broadcast %175 : f32 to vector<1x256xf32>
    %178 = arith.mulf %177, %176 : vector<1x256xf32>
    %179 = arith.addf %174, %178 : vector<1x256xf32>
    %c9_34 = arith.constant 9 : index
    %180 = memref.load %arg3[%c9_34] : memref<16xf32, #tpu.memory_space<smem>>
    %181 = vector.extract_strided_slice %128 {offsets = [1, 0], sizes = [1, 256], strides = [1, 1]} : vector<4x256xf32> to vector<1x256xf32>
    %182 = vector.broadcast %180 : f32 to vector<1x256xf32>
    %183 = arith.mulf %182, %181 : vector<1x256xf32>
    %184 = arith.addf %179, %183 : vector<1x256xf32>
    %c10_35 = arith.constant 10 : index
    %185 = memref.load %arg3[%c10_35] : memref<16xf32, #tpu.memory_space<smem>>
    %186 = vector.extract_strided_slice %128 {offsets = [2, 0], sizes = [1, 256], strides = [1, 1]} : vector<4x256xf32> to vector<1x256xf32>
    %187 = vector.broadcast %185 : f32 to vector<1x256xf32>
    %188 = arith.mulf %187, %186 : vector<1x256xf32>
    %189 = arith.addf %184, %188 : vector<1x256xf32>
    %c11_36 = arith.constant 11 : index
    %190 = memref.load %arg3[%c11_36] : memref<16xf32, #tpu.memory_space<smem>>
    %191 = vector.extract_strided_slice %128 {offsets = [3, 0], sizes = [1, 256], strides = [1, 1]} : vector<4x256xf32> to vector<1x256xf32>
    %192 = vector.broadcast %190 : f32 to vector<1x256xf32>
    %193 = arith.mulf %192, %191 : vector<1x256xf32>
    %194 = arith.addf %189, %193 : vector<1x256xf32>
    %c3_37 = arith.constant 3 : index
    %195 = memref.load %arg4[%c3_37] : memref<4xf32, #tpu.memory_space<smem>>
    %196 = vector.broadcast %195 : f32 to vector<1x256xf32>
    %c12_38 = arith.constant 12 : index
    %197 = memref.load %arg3[%c12_38] : memref<16xf32, #tpu.memory_space<smem>>
    %198 = vector.extract_strided_slice %128 {offsets = [0, 0], sizes = [1, 256], strides = [1, 1]} : vector<4x256xf32> to vector<1x256xf32>
    %199 = vector.broadcast %197 : f32 to vector<1x256xf32>
    %200 = arith.mulf %199, %198 : vector<1x256xf32>
    %201 = arith.addf %196, %200 : vector<1x256xf32>
    %c13_39 = arith.constant 13 : index
    %202 = memref.load %arg3[%c13_39] : memref<16xf32, #tpu.memory_space<smem>>
    %203 = vector.extract_strided_slice %128 {offsets = [1, 0], sizes = [1, 256], strides = [1, 1]} : vector<4x256xf32> to vector<1x256xf32>
    %204 = vector.broadcast %202 : f32 to vector<1x256xf32>
    %205 = arith.mulf %204, %203 : vector<1x256xf32>
    %206 = arith.addf %201, %205 : vector<1x256xf32>
    %c14_40 = arith.constant 14 : index
    %207 = memref.load %arg3[%c14_40] : memref<16xf32, #tpu.memory_space<smem>>
    %208 = vector.extract_strided_slice %128 {offsets = [2, 0], sizes = [1, 256], strides = [1, 1]} : vector<4x256xf32> to vector<1x256xf32>
    %209 = vector.broadcast %207 : f32 to vector<1x256xf32>
    %210 = arith.mulf %209, %208 : vector<1x256xf32>
    %211 = arith.addf %206, %210 : vector<1x256xf32>
    %c15_41 = arith.constant 15 : index
    %212 = memref.load %arg3[%c15_41] : memref<16xf32, #tpu.memory_space<smem>>
    %213 = vector.extract_strided_slice %128 {offsets = [3, 0], sizes = [1, 256], strides = [1, 1]} : vector<4x256xf32> to vector<1x256xf32>
    %214 = vector.broadcast %212 : f32 to vector<1x256xf32>
    %215 = arith.mulf %214, %213 : vector<1x256xf32>
    %216 = arith.addf %211, %215 : vector<1x256xf32>
    %217 = tpu.concatenate %150, %172, %194, %216 in 0 : vector<1x256xf32>, vector<1x256xf32>, vector<1x256xf32>, vector<1x256xf32> -> vector<4x256xf32>
    %218 = arith.addf %217, %112 : vector<4x256xf32>
    %c1_42 = arith.constant 1 : index
    %c0_43 = arith.constant 0 : index
    %c0_44 = arith.constant 0 : index
    %219 = vector.load %arg5[%c1_42, %c0_43, %c0_44] : memref<2x4x256xf32, #tpu.memory_space<vmem>>, vector<1x4x256xf32>
    %220 = vector.shape_cast %219 : vector<1x4x256xf32> to vector<4x256xf32>
    %221 = vector.shape_cast %218 : vector<4x256xf32> to vector<1x4x256xf32>
    tpu.vector_store %arg5[%c1_42, %c0_43, %c0_44], %221 {strides = array<i32>} : memref<2x4x256xf32, #tpu.memory_space<vmem>>, vector<1x4x256xf32>,
    return
  }
  func.func @transform_0(%arg0: i32, %arg1: i32) -> (i32, i32, i32) {
    %c0_i32 = arith.constant 0 : i32
    %c0_i32_0 = arith.constant 0 : i32
    return %arg0, %c0_i32, %arg1 : i32, i32, i32
  }
  func.func @transform_1(%arg0: i32, %arg1: i32) -> i32 {
    %c0_i32 = arith.constant 0 : i32
    %c0_i32_0 = arith.constant 0 : i32
    return %c0_i32 : i32
  }
  func.func @transform_2(%arg0: i32, %arg1: i32) -> i32 {
    %c0_i32 = arith.constant 0 : i32
    %c0_i32_0 = arith.constant 0 : i32
    return %c0_i32 : i32
  }
  func.func @transform_3(%arg0: i32, %arg1: i32) -> (i32, i32, i32) {
    %c0_i32 = arith.constant 0 : i32
    %c0_i32_0 = arith.constant 0 : i32
    return %arg0, %c0_i32, %arg1 : i32, i32, i32
  }
}

</mosaic_0001>

<bundles_post_ra>
// kernel: tpu_custom_call.1
= control target key start
LH: loop header
LB: loop body
LE: loop exit
PB: predicated region body
PF: predicated region fallthrough
CT: control target
= control target key end

     0   :  { %8 = vsyncpa [#allocation3], 0  ;;  %s967_s0 = inlined_call_operand.hbm [shape: f32[2,4,256], index: 0, kind: input, shape index: {}]   ;;  %s968_s1 = inlined_call_operand.vmem [shape: f32[16], index: 1, kind: input, shape index: {}]   ;;  %s969_s2 = inlined_call_operand.vmem [shape: f32[4], index: 2, kind: input, shape index: {}]   ;;  %s970_s3 = inlined_call_operand.hbm [shape: f32[2,4,256], index: 3, kind: output, shape index: {}]  }
   0x1   :  { %9 = vsyncpa [#allocation5], 0 }
   0x2   :  { %10 = vsyncpa [#allocation8], 0 }
   0x3   :  { %11 = vsyncpa [#allocation4], 0  ;;  %s693_s12 = smov [#allocation2]   ;;  %s30_s16 = sshll.u32 %s968_s1, 4  ;;  %s31_s16 = int_to_ptr.vmem [resolvable:$true] %s30_s16 }
   0x4   :  { %s17_s13 = sshll.u32 %s693_s12, 4  ;;  %s617_s19 = scalar_lea.hbm %s967_s0, 256  ;;  %s18_s13 = int_to_ptr.vmem [resolvable:$true] %s17_s13 }
   0x5   :  { %p618_p0 = scmp.ne.s32.totalorder %s967_s0, %s617_s19  ;;  %p621_p1 = scmp.lt.u32.totalorder %s617_s19, %s967_s0 }
   0x7   :  { %p623_p2 = pnand %p621_p1, %p618_p0 }
   0x9   :  { %626 = shalt.err (!%p623_p2)
}
   0xa   :  { %s627_s24 = scalar_lea.vmem %s18_s13, 256  ;;  %p632_p4 = scmp.lt.s32.totalorder %s18_s13, %s18_s13 }
   0xb   :  { %p628_p3 = scmp.ne.s32.totalorder %s18_s13, %s627_s24  ;;  %p633_p5 = scmp.lt.s32.totalorder %s627_s24, %s627_s24 }
   0xd   :  { %p634_p6 = por %p633_p5, %p632_p4 }
   0xf   :  { %p635_p7 = pnand %p634_p6, %p628_p3 }
  0x11   :  { %638 = shalt.err (!%p635_p7)
}
  0x12   :  { %s694_s1 = smov 128   ;;  %s695_s25 = smov 8  }
  0x13   :  { %23 = dma.hbm_to_vmem [thread:$0]  %s967_s0, 256, %s18_s13, [#allocation3], %s694_s1, %s694_s1, %s695_s25  }
  0x14   :  { %s639_s28 = scalar_lea.vmem %s31_s16, 16  ;;  %p644_p9 = scmp.lt.s32.totalorder %s31_s16, %s31_s16 }
  0x15   :  { %p640_p8 = scmp.ne.s32.totalorder %s31_s16, %s639_s28  ;;  %p645_p10 = scmp.lt.s32.totalorder %s639_s28, %s639_s28 }
  0x17   :  { %p646_p11 = por %p645_p10, %p644_p9 }
  0x19   :  { %p647_p12 = pnand %p646_p11, %p640_p8 }
  0x1b   :  { %650 = shalt.err (!%p647_p12)
}
  0x1c   :  { %s696_s29 = smov [#allocation6]   ;;  %s40_s5 = sshll.u32 %s969_s2, 4  ;;  %s41_s5 = int_to_ptr.vmem [resolvable:$true] %s40_s5 }
  0x1d   :  { %33 = dma.vmem_to_smem %s31_s16, 16, %s696_s29, [#allocation5]  }
  0x1e   :  { %s651_s6 = scalar_lea.vmem %s41_s5, 16  ;;  %p656_p0 = scmp.lt.s32.totalorder %s41_s5, %s41_s5 }
  0x1f   :  { %p652_p13 = scmp.ne.s32.totalorder %s41_s5, %s651_s6  ;;  %p657_p1 = scmp.lt.s32.totalorder %s651_s6, %s651_s6 }
  0x21   :  { %p658_p2 = por %p657_p1, %p656_p0 }
  0x23   :  { %p659_p3 = pnand %p658_p2, %p652_p13 }
  0x25   :  { %662 = shalt.err (!%p659_p3)
}
  0x26   :  { %s697_s0 = smov [#allocation7]  }
  0x27   :  { %43 = dma.vmem_to_smem %s41_s5, 16, %s697_s0, [#allocation8]  }
  0x28   :  { %685 = dma.done.wait [#allocation3], 256  }
  0x29   :  { %686 = vsyncadd [#allocation3], 4294967040 }
  0x2a   :  { %687 = dma.done.wait [#allocation5], 16  }
  0x2b   :  { %688 = vsyncadd [#allocation5], 4294967280 }
  0x2c   :  { %689 = dma.done.wait [#allocation8], 16  }
  0x2d   :  { %690 = vsyncadd [#allocation8], 4294967280 }
  0x2e   :  { %53 = sfence }
  0x2f   :  { %v740_v0 = vld [vmem:[#allocation2] sm:$0xff]  ;;  %vm58_vm0 = vcmask 1043456   ;;  %v750_v9 = vld [vmem:[#allocation2 + $0x8] sm:$0xff]  ;;  %s774_s2 = sld [smem:[#allocation7]]  ;;  %s778_s8 = sld [smem:[#allocation6 + $0x1]]  ;;  %vm273_vm1 = vcmask 1040384  }
  0x30   :  { %v744_v1 = vcombine.high %v740_v0, %v740_v0  ;;  %v59_v2 = vsel %vm58_vm0, %v740_v0, 0.0  ;;  %v754_v10 = vcombine.high %v750_v9, %v750_v9  ;;  %v294_v11 = vsel %vm58_vm0, %v750_v9, 0.0  ;;  %s776_s7 = sld [smem:[#allocation6]]  ;;  %s780_s9 = sld [smem:[#allocation6 + $0x2]] }
  0x31   :  { %v60_v3 = vrot.slane %v59_v2, 4  ;;  %v295_v14 = vrot.slane %v294_v11, 4  ;;  %s782_s10 = sld [smem:[#allocation6 + $0x3]]  ;;  %s784_s11 = sld [smem:[#allocation7 + $0x1]]  ;;  %vm276_vm2 = vcmask 1041408   ;;  %vm279_vm3 = vcmask 1042432  }
  0x32   :  { %v66_v4 = vsel %vm58_vm0, %v744_v1, 0.0  ;;  %v301_v15 = vsel %vm58_vm0, %v754_v10, 0.0  ;;  %s786_s12 = sld [smem:[#allocation6 + $0x4]]  ;;  %s788_s13 = sld [smem:[#allocation6 + $0x5]] }
  0x33   :  { %v61_v5 = vadd.f32 %v60_v3, %v59_v2  ;;  %v67_v6 = vrot.slane %v66_v4, 4  ;;  %v296_v18 = vadd.f32 %v295_v14, %v294_v11  ;;  %v302_v19 = vrot.slane %v301_v15, 4  ;;  %s790_s14 = sld [smem:[#allocation6 + $0x6]]  ;;  %s792_s15 = sld [smem:[#allocation6 + $0x7]] }
  0x34   :  { %s794_s16 = sld [smem:[#allocation7 + $0x2]]  ;;  %s796_s17 = sld [smem:[#allocation6 + $0x8]] }
  0x35   :  { %v62_v7 = vrot.slane %v61_v5, 2  ;;  %v68_v8 = vadd.f32 %v67_v6, %v66_v4  ;;  %v297_v22 = vrot.slane %v296_v18, 2  ;;  %v303_v23 = vadd.f32 %v302_v19, %v301_v15  ;;  %s798_s18 = sld [smem:[#allocation6 + $0x9]]  ;;  %s800_s19 = sld [smem:[#allocation6 + $0xa]] }
  0x36   :  { %v230_v15 = vlaneseq  ;;  %s802_s20 = sld [smem:[#allocation6 + $0xb]]  ;;  %s806_s22 = sld [smem:[#allocation6 + $0xc]] }
  0x37   :  { %v63_v12 = vadd.f32 %v62_v7, %v61_v5  ;;  %v69_v13 = vrot.slane %v68_v8, 2  ;;  %v298_v26 = vadd.f32 %v297_v22, %v296_v18  ;;  %v304_v27 = vrot.slane %v303_v23, 2  ;;  %s804_s21 = sld [smem:[#allocation7 + $0x3]]  ;;  %s808_s23 = sld [smem:[#allocation6 + $0xd]] }
  0x38   :  { %v231_v19 = vshrl.u32 %v230_v15, 7  ;;  %s810_s24 = sld [smem:[#allocation6 + $0xe]]  ;;  %s812_s26 = sld [smem:[#allocation6 + $0xf]] }
  0x39   :  { %v64_v16 = vrot.slane %v63_v12, 1  ;;  %v70_v17 = vadd.f32 %v69_v13, %v68_v8  ;;  %v299_v29 = vrot.slane %v298_v26, 1  ;;  %v305_v30 = vadd.f32 %v304_v27, %v303_v23  ;;  %s698_s27 = smov [#allocation9]  }
  0x3a   :  { %v814_v23 = vsub.s32 0, %v231_v19  ;;  %v116_v27 = vstv %s778_s8  ;;  %s527_s28 = sshll.u32 %s698_s27, 4  ;;  %s528_s28 = int_to_ptr.vmem [resolvable:$true] %s527_s28 }
  0x3b   :  { %v65_v20 = vadd.f32 %v64_v16, %v63_v12  ;;  %v71_v21 = vrot.slane %v70_v17, 1  ;;  %v300_v32 = vadd.f32 %v299_v29, %v298_v26  ;;  %v306_v33 = vrot.slane %v305_v30, 1  ;;  %s663_s29 = scalar_lea.vmem %s528_s28, 256  ;;  %p668_p5 = scmp.lt.s32.totalorder %s528_s28, %s528_s28 }
  0x3c   :  { %v112_v26 = vstv %s776_s7  ;;  %p664_p4 = scmp.ne.s32.totalorder %s528_s28, %s663_s29  ;;  %p669_p6 = scmp.lt.s32.totalorder %s663_s29, %s663_s29 }
  0x3d   :  { %v72_v24 = vadd.f32 %v71_v21, %v70_v17  ;;  %v73_v25 = vmul.f32 0.25, %v65_v20  ;;  %v307_v35 = vadd.f32 %v306_v33, %v305_v30  ;;  %v308_v36 = vmul.f32 0.25, %v300_v32 }
  0x3e   :  { %v132_v30 = vstv %s782_s10  ;;  %v142_v32 = vstv %s786_s12  ;;  %p670_p7 = por %p669_p6, %p668_p5 }
  0x3f   :  { %v74_v28 = vmul.f32 0.25, %v72_v24  ;;  %v309_v38 = vmul.f32 0.25, %v307_v35  ;;  %v816_v24 = vsub.s32 4, %v231_v19  ;;  %v146_v35 = vstv %s788_s13 }
  0x40   :  { %p671_p8 = pnand %p670_p7, %p664_p4 }
  0x41   :  { %v77_v31 = vcombine.low %v73_v25, %v74_v28  ;;  %v312_v42 = vcombine.low %v308_v36, %v309_v38  ;;  %v110_v25 = vstv %s774_s2  ;;  %v124_v28 = vstv %s780_s9 }
  0x42   :  { %v154_v36 = vstv %s790_s14  ;;  %v170_v38 = vstv %s794_s16 }
  0x43   :  { %v761_v34 = vsub.f32 %v740_v0, %v77_v31  ;;  %v768_v46 = vsub.f32 %v750_v9, %v312_v42  ;;  %v140_v31 = vstv %s784_s11  ;;  %v184_v42 = vstv %s800_s19 }
  0x45   :  { %v80_v37 = vmul.f32 %v761_v34, %v761_v34  ;;  %v315_v49 = vmul.f32 %v768_v46, %v768_v46 }
  0x47   :  { %v82_v39 = vcombine.high %v80_v37, %v80_v37  ;;  %v84_v40 = vsel %vm58_vm0, %v80_v37, 0.0  ;;  %v317_v52 = vcombine.high %v315_v49, %v315_v49  ;;  %v319_v53 = vsel %vm58_vm0, %v315_v49, 0.0 }
  0x48   :  { %v85_v41 = vrot.slane %v84_v40, 4  ;;  %v320_v54 = vrot.slane %v319_v53, 4  ;;  %v162_v37 = vstv %s792_s15  ;;  %v222_v49 = vstv %s812_s26 }
  0x49   :  { %v91_v43 = vsel %vm58_vm0, %v82_v39, 0.0  ;;  %v326_v57 = vsel %vm58_vm0, %v317_v52, 0.0  ;;  %v172_v39 = vstv %s796_s17 }
  0x4a   :  { %v86_v44 = vadd.f32 %v85_v41, %v84_v40  ;;  %v92_v45 = vrot.slane %v91_v43, 4  ;;  %v321_v58 = vadd.f32 %v320_v54, %v319_v53  ;;  %v327_v59 = vrot.slane %v326_v57, 4 }
  0x4b   :  { %v176_v40 = vstv %s798_s18 }
  0x4c   :  { %v87_v47 = vrot.slane %v86_v44, 2  ;;  %v93_v48 = vadd.f32 %v92_v45, %v91_v43  ;;  %v322_v62 = vrot.slane %v321_v58, 2  ;;  %v328_v63 = vadd.f32 %v327_v59, %v326_v57 }
  0x4d   :  { %v192_v43 = vstv %s802_s20  ;;  %v202_v45 = vstv %s806_s22 }
  0x4e   :  { %v88_v50 = vadd.f32 %v87_v47, %v86_v44  ;;  %v94_v51 = vrot.slane %v93_v48, 2  ;;  %v323_v4 = vadd.f32 %v322_v62, %v321_v58  ;;  %v329_v5 = vrot.slane %v328_v63, 2 }
  0x4f   :  { %v200_v44 = vstv %s804_s21  ;;  %v206_v47 = vstv %s808_s23 }
  0x50   :  { %v89_v55 = vrot.slane %v88_v50, 1  ;;  %v95_v56 = vadd.f32 %v94_v51, %v93_v48  ;;  %v324_v8 = vrot.slane %v323_v4, 1  ;;  %v330_v11 = vadd.f32 %v329_v5, %v328_v63 }
  0x51   :  { %v214_v48 = vstv %s810_s24 }
  0x52   :  { %v90_v60 = vadd.f32 %v89_v55, %v88_v50  ;;  %v96_v61 = vrot.slane %v95_v56, 1  ;;  %v325_v13 = vadd.f32 %v324_v8, %v323_v4  ;;  %v331_v14 = vrot.slane %v330_v11, 1 }
  0x54   :  { %v97_v2 = vadd.f32 %v96_v61, %v95_v56  ;;  %v98_v3 = vmul.f32 0.25, %v90_v60  ;;  %v332_v16 = vadd.f32 %v331_v14, %v330_v11  ;;  %v333_v17 = vmul.f32 0.25, %v325_v13 }
  0x56   :  { %v99_v6 = vmul.f32 0.25, %v97_v2  ;;  %v100_v7 = vadd.f32 1e-05, %v98_v3  ;;  %v334_v18 = vmul.f32 0.25, %v332_v16  ;;  %v335_v20 = vadd.f32 1e-05, %v333_v17 }
  0x58   :  { %v101_v12 = vadd.f32 1e-05, %v99_v6  ;;  %609 = vrsqrt.f32 %v100_v7  ;;  %v336_v21 = vadd.f32 1e-05, %v334_v18 }
  0x5a   :  { %611 = vrsqrt.f32 %v101_v12 }
  0x5b   :  { %613 = vrsqrt.f32 %v335_v20 }
  0x5c   :  { %615 = vrsqrt.f32 %v336_v21 }
  0x62   :  { %v610_v22 = vpop.eup %609 }
  0x64   :  { %v612_v29 = vpop.eup %611 }
  0x65   :  { %v106_v33 = vcombine.low %v610_v22, %v612_v29  ;;  %v614_v7 = vpop.eup %613 }
  0x66   :  { %v616_v14 = vpop.eup %615 }
  0x67   :  { %v108_v41 = vmul.f32 %v106_v33, %v761_v34 }
  0x69   :  { %v113_v50 = vmul.f32 %v112_v26, %v108_v41  ;;  %v117_v51 = vmul.f32 %v116_v27, %v108_v41  ;;  %v125_v52 = vmul.f32 %v124_v28, %v108_v41  ;;  %v133_v53 = vmul.f32 %v132_v30, %v108_v41 }
  0x6a   :  { %v143_v34 = vmul.f32 %v142_v32, %v108_v41  ;;  %v147_v54 = vmul.f32 %v146_v35, %v108_v41  ;;  %v155_v55 = vmul.f32 %v154_v36, %v108_v41  ;;  %v163_v56 = vmul.f32 %v162_v37, %v108_v41 }
  0x6b   :  { %v114_v57 = vadd.f32 %v113_v50, %v110_v25  ;;  %v542_v58 = vrot.slane %v117_v51, 9  ;;  %v544_v59 = vrot.slane %v125_v52, 10  ;;  %v546_v60 = vrot.slane %v133_v53, 11 }
  0x6c   :  { %v144_v61 = vadd.f32 %v143_v34, %v140_v31  ;;  %v550_v62 = vrot.slane %v147_v54, 9  ;;  %v552_v63 = vrot.slane %v155_v55, 10  ;;  %v554_v2 = vrot.slane %v163_v56, 11 }
  0x6d   :  { %v122_v3 = vadd.f32 %v542_v58, %v114_v57  ;;  %v173_v4 = vmul.f32 %v172_v39, %v108_v41  ;;  %v177_v5 = vmul.f32 %v176_v40, %v108_v41  ;;  %v185_v6 = vmul.f32 %v184_v42, %v108_v41 }
  0x6e   :  { %v152_v8 = vadd.f32 %v550_v62, %v144_v61  ;;  %v193_v11 = vmul.f32 %v192_v43, %v108_v41  ;;  %v203_v12 = vmul.f32 %v202_v45, %v108_v41  ;;  %v207_v13 = vmul.f32 %v206_v47, %v108_v41 }
  0x6f   :  { %v130_v15 = vadd.f32 %v544_v59, %v122_v3  ;;  %v174_v16 = vadd.f32 %v173_v4, %v170_v38  ;;  %v558_v17 = vrot.slane %v177_v5, 9  ;;  %v560_v18 = vrot.slane %v185_v6, 10 }
  0x70   :  { %v160_v19 = vadd.f32 %v552_v63, %v152_v8  ;;  %v562_v20 = vrot.slane %v193_v11, 11  ;;  %v204_v21 = vadd.f32 %v203_v12, %v200_v44  ;;  %v566_v22 = vrot.slane %v207_v13, 9 }
  0x71   :  { %v138_v29 = vadd.f32 %v546_v60, %v130_v15  ;;  %v182_v33 = vadd.f32 %v558_v17, %v174_v16  ;;  %v215_v50 = vmul.f32 %v214_v48, %v108_v41  ;;  %v223_v51 = vmul.f32 %v222_v49, %v108_v41 }
  0x72   :  { %v168_v52 = vadd.f32 %v554_v2, %v160_v19  ;;  %v212_v53 = vadd.f32 %v566_v22, %v204_v21  ;;  %v341_v34 = vcombine.low %v614_v7, %v616_v14 }
  0x73   :  { %v190_v54 = vadd.f32 %v560_v18, %v182_v33  ;;  %v568_v55 = vrot.slane %v215_v50, 10  ;;  %v570_v56 = vrot.slane %v223_v51, 11  ;;  %v233_v57 = vrot.slane %v138_v29, %v814_v23 }
  0x74   :  { %v237_v58 = vrot.slane %v138_v29, %v816_v24  ;;  %v244_v59 = vrot.slane %v168_v52, %v814_v23  ;;  %v248_v60 = vrot.slane %v168_v52, %v816_v24  ;;  %v343_v41 = vmul.f32 %v341_v34, %v768_v46 }
  0x75   :  { %v198_v61 = vadd.f32 %v562_v20, %v190_v54  ;;  %v220_v62 = vadd.f32 %v568_v55, %v212_v53 }
  0x76   :  { %v274_v63 = vsel %vm273_vm1, %v233_v57, %v244_v59  ;;  %v275_v2 = vsel %vm273_vm1, %v237_v58, %v248_v60  ;;  %v348_v3 = vmul.f32 %v343_v41, %v112_v26  ;;  %v352_v4 = vmul.f32 %v343_v41, %v116_v27 }
  0x77   :  { %v228_v5 = vadd.f32 %v570_v56, %v220_v62  ;;  %v255_v6 = vrot.slane %v198_v61, %v814_v23  ;;  %v259_v7 = vrot.slane %v198_v61, %v816_v24  ;;  %v360_v46 = vmul.f32 %v343_v41, %v124_v28 }
  0x78   :  { %v349_v8 = vadd.f32 %v348_v3, %v110_v25  ;;  %v572_v11 = vrot.slane %v352_v4, 9  ;;  %v368_v12 = vmul.f32 %v343_v41, %v132_v30  ;;  %v378_v13 = vmul.f32 %v343_v41, %v142_v32 }
  0x79   :  { %v266_v26 = vrot.slane %v228_v5, %v814_v23  ;;  %v270_v27 = vrot.slane %v228_v5, %v816_v24  ;;  %v277_v14 = vsel %vm276_vm2, %v274_v63, %v255_v6  ;;  %v278_v15 = vsel %vm276_vm2, %v275_v2, %v259_v7 }
  0x7a   :  { %v357_v28 = vadd.f32 %v572_v11, %v349_v8  ;;  %v574_v16 = vrot.slane %v360_v46, 10  ;;  %v576_v17 = vrot.slane %v368_v12, 11  ;;  %v379_v25 = vadd.f32 %v378_v13, %v140_v31 }
  0x7b   :  { %v280_v30 = vsel %vm279_vm3, %v277_v14, %v266_v26  ;;  %v281_v32 = vsel %vm279_vm3, %v278_v15, %v270_v27  ;;  %v382_v18 = vmul.f32 %v343_v41, %v146_v35  ;;  %v390_v19 = vmul.f32 %v343_v41, %v154_v36 }
  0x7c   :  { %v282_v20 = vadd.f32 %v280_v30, %v740_v0  ;;  %v283_v21 = vadd.f32 %v281_v32, %v744_v1  ;;  %v365_v22 = vadd.f32 %v574_v16, %v357_v28  ;;  %v398_v29 = vmul.f32 %v343_v41, %v162_v37 }
  0x7d   :  { %v580_v31 = vrot.slane %v382_v18, 9  ;;  %v582_v33 = vrot.slane %v390_v19, 10  ;;  %v408_v50 = vmul.f32 %v343_v41, %v172_v39  ;;  %v412_v51 = vmul.f32 %v343_v41, %v176_v40 }
  0x7e   :  { %v286_v35 = vcombine.low %v282_v20, %v283_v21  ;;  %v373_v36 = vadd.f32 %v576_v17, %v365_v22  ;;  %v584_v52 = vrot.slane %v398_v29, 11  ;;  %v420_v0 = vmul.f32 %v343_v41, %v184_v42 }
  0x7f   :  { %v387_v1 = vadd.f32 %v580_v31, %v379_v25  ;;  %v409_v53 = vadd.f32 %v408_v50, %v170_v38  ;;  %v588_v34 = vrot.slane %v412_v51, 9  ;;  %v428_v37 = vmul.f32 %v343_v41, %v192_v43 }
  0x80   :  { %288 = vst [vmem:[#allocation9] sm:$0xff] %v286_v35  ;;  %v590_v54 = vrot.slane %v420_v0, 10  ;;  %v438_v55 = vmul.f32 %v343_v41, %v202_v45  ;;  %v442_v39 = vmul.f32 %v343_v41, %v206_v47  ;;  %v450_v40 = vmul.f32 %v343_v41, %v214_v48 }
  0x81   :  { %v395_v56 = vadd.f32 %v582_v33, %v387_v1  ;;  %v417_v57 = vadd.f32 %v588_v34, %v409_v53  ;;  %v592_v58 = vrot.slane %v428_v37, 11  ;;  %v458_v59 = vmul.f32 %v343_v41, %v222_v49 }
  0x82   :  { %v439_v42 = vadd.f32 %v438_v55, %v200_v44  ;;  %v596_v60 = vrot.slane %v442_v39, 9  ;;  %v598_v38 = vrot.slane %v450_v40, 10  ;;  %v468_v43 = vrot.slane %v373_v36, %v814_v23 }
  0x83   :  { %v403_v61 = vadd.f32 %v584_v52, %v395_v56  ;;  %v425_v62 = vadd.f32 %v590_v54, %v417_v57  ;;  %v472_v63 = vrot.slane %v373_v36, %v816_v24  ;;  %v600_v2 = vrot.slane %v458_v59, 11 }
  0x84   :  { %v447_v45 = vadd.f32 %v596_v60, %v439_v42 }
  0x85   :  { %v433_v47 = vadd.f32 %v592_v58, %v425_v62  ;;  %v479_v48 = vrot.slane %v403_v61, %v814_v23  ;;  %v483_v3 = vrot.slane %v403_v61, %v816_v24 }
  0x86   :  { %v455_v4 = vadd.f32 %v598_v38, %v447_v45 }
  0x87   :  { %v490_v49 = vrot.slane %v433_v47, %v814_v23  ;;  %v494_v44 = vrot.slane %v433_v47, %v816_v24  ;;  %v508_v41 = vsel %vm273_vm1, %v468_v43, %v479_v48  ;;  %v509_v5 = vsel %vm273_vm1, %v472_v63, %v483_v3 }
  0x88   :  { %v463_v6 = vadd.f32 %v600_v2, %v455_v4 }
  0x89   :  { %v510_v7 = vsel %vm276_vm2, %v508_v41, %v490_v49  ;;  %v511_v46 = vsel %vm276_vm2, %v509_v5, %v494_v44 }
  0x8a   :  { %v501_v8 = vrot.slane %v463_v6, %v814_v23  ;;  %v505_v11 = vrot.slane %v463_v6, %v816_v24 }
  0x8c   :  { %v512_v12 = vsel %vm279_vm3, %v510_v7, %v501_v8  ;;  %v513_v13 = vsel %vm279_vm3, %v511_v46, %v505_v11 }
  0x8d   :  { %v514_v26 = vadd.f32 %v512_v12, %v750_v9  ;;  %v515_v27 = vadd.f32 %v513_v13, %v754_v10 }
  0x8f   :  { %v518_v14 = vcombine.low %v514_v26, %v515_v27 }
  0x91   :  { %521 = vst [vmem:[#allocation9 + $0x8] sm:$0xff] %v518_v14 }
  0x92   :  { %674 = shalt.err (!%p671_p8)
}
  0x93   :  { %s675_s5 = scalar_lea.hbm %s970_s3, 256 }
  0x94   :  { %p676_p9 = scmp.ne.s32.totalorder %s970_s3, %s675_s5  ;;  %p679_p10 = scmp.lt.u32.totalorder %s675_s5, %s970_s3 }
  0x96   :  { %p681_p11 = pnand %p679_p10, %p676_p9 }
  0x98   :  { %684 = shalt.err (!%p681_p11)
}
  0x99   :  { %533 = dma.vmem_to_hbm [thread:$0]  %s528_s28, 256, %s970_s3, [#allocation4], %s694_s1, %s694_s1, %s695_s25  }
  0x9a   :  { %691 = dma.done.wait [#allocation4], 256  }
  0x9b   :  { %692 = vsyncadd [#allocation4], 4294967040 }
  0x9c   :  { %537 = vsyncpa [#allocation3], 1 }
  0x9d   :  { %538 = vsyncpa [#allocation4], 1 }
  0x9e   :  { %539 = vsyncpa [#allocation5], 1 }
  0x9f   :  { %540 = vsyncpa [#allocation8], 1 }

</bundles_post_ra>
